<compile_context>
chip_gen: v7x
topology: tpu7x:2x2x1
jax: 0.10.0
libtpu: 0.0.40
codegen_flags: <defaults>
</compile_context>

<pallas_src>
import math

import jax
import jax.numpy as jnp
from jax.experimental import pallas as pl
from jax.experimental.pallas import tpu as pltpu


def _round_up(x, m):
    return ((x + m - 1) // m) * m


def _make_pe_copy_kernel(tq, last_rows, n_tiles):
    """Per grid step i: DMA pe rows [offset + i*tq, offset + i*tq + rows) into o_ref."""

    def kernel(off_ref, pe_hbm, o_ref, sem):
        i = pl.program_id(0)
        start = off_ref[0] + i * tq

        if last_rows == tq:
            # seq_len is a multiple of tq: every tile is full.
            cp = pltpu.make_async_copy(pe_hbm.at[pl.ds(start, tq), :], o_ref, sem)
            cp.start()
            cp.wait()
        else:
            @pl.when(i < n_tiles - 1)
            def _full_tile():
                cp = pltpu.make_async_copy(pe_hbm.at[pl.ds(start, tq), :], o_ref, sem)
                cp.start()
                cp.wait()

            @pl.when(i == n_tiles - 1)
            def _ragged_tail():
                # Statically-sized tail: never reads past offset + seq_len in HBM.
                # Rows >= last_rows of this block are dropped by the partial-block
                # writeback (out_shape has exactly seq_len rows).
                cp = pltpu.make_async_copy(
                    pe_hbm.at[pl.ds(start, last_rows), :],
                    o_ref.at[pl.ds(0, last_rows), :],
                    sem)
                cp.start()
                cp.wait()

    return kernel


def learnable_positional_embedding_fwd(pe, x, offset=0, *, tile_rows=1024,
                                       min_pallas_bytes=256 * 1024,
                                       force_pallas=False):
    """pe: (1, 1, max_len, d_model); x: (..., seq_len, d_model) — only x.shape[2] is used.

    Returns pe[:, :, offset:offset + x.shape[2], :], matching the PyTorch forward.
    `offset` may be a Python int or a traced int32 scalar.
    Precondition: 0 <= offset and offset + seq_len <= max_len (checked only for
    concrete ints; a violating traced offset trips the DMA bounds check at runtime).

    tile_rows guidance: v6e 1024-2048, v7x/v5e 512-1024 (default 1024 fits all).
    """
    max_len, d_model = pe.shape[2], pe.shape[3]
    seq_len = x.shape[2]
    pe2 = pe.reshape(max_len, d_model)

    if isinstance(offset, int):
        assert 0 <= offset and offset + seq_len <= max_len, "offset window out of range"

    nbytes = seq_len * d_model * jnp.dtype(pe.dtype).itemsize
    if (not force_pallas) and nbytes < min_pallas_bytes:
        # Small-problem fallback: XLA dynamic-slice is already at roofline here.
        out = jax.lax.dynamic_slice_in_dim(
            pe2, jnp.asarray(offset, jnp.int32), seq_len, axis=0)
        return out.reshape(1, 1, seq_len, d_model)

    tq = min(_round_up(seq_len, 8), _round_up(tile_rows, 8))   # output row tile
    n_tiles = pl.cdiv(seq_len, tq)
    last_rows = seq_len - (n_tiles - 1) * tq                   # static ragged-tail size

    off_arr = jnp.asarray(offset, jnp.int32).reshape(1)

    out = pl.pallas_call(
        _make_pe_copy_kernel(tq, last_rows, n_tiles),
        out_shape=jax.ShapeDtypeStruct((seq_len, d_model), pe.dtype),
        grid_spec=pltpu.PrefetchScalarGridSpec(
            num_scalar_prefetch=1,
            grid=(n_tiles,),
            in_specs=[pl.BlockSpec(memory_space=pl.ANY)],       # pe stays in HBM
            out_specs=pl.BlockSpec((tq, d_model), lambda i, off: (i, 0)),
            scratch_shapes=[pltpu.SemaphoreType.DMA(())],
        ),
        compiler_params=pltpu.CompilerParams(
            dimension_semantics=("parallel",)),
    )(off_arr, pe2)

    return out.reshape(1, 1, seq_len, d_model)


def learnable_positional_embedding_ref(pe, x, offset=0):
    """Pure-JAX reference mirroring the PyTorch forward."""
    seq_len = x.shape[2]
    return pe[:, :, offset:offset + seq_len, :]


def init_pe(max_len, d_model, key=None):
    """Sin/cos init copied into the learnable parameter (matches the PyTorch __init__),
    plus a small deterministic perturbation to emulate a 'learned' table."""
    position = jnp.arange(max_len, dtype=jnp.float32)[:, None]
    div_term = jnp.exp(jnp.arange(0, d_model, 2, dtype=jnp.float32)
                       * -(math.log(10000.0) / d_model))
    pe = jnp.zeros((max_len, d_model), jnp.float32)
    pe = pe.at[:, 0::2].set(jnp.sin(position * div_term))
    pe = pe.at[:, 1::2].set(jnp.cos(position * div_term))
    pe = pe.reshape(1, 1, max_len, d_model)
    if key is not None:
        pe = pe + 0.01 * jax.random.normal(key, pe.shape, jnp.float32)
    return pe


if __name__ == "__main__":
    key = jax.random.PRNGKey(0)
    kx, kp, kx2, kp2 = jax.random.split(key, 4)

    # Test 1: demo shape (single tile, unaligned offset, d_model < 128).
    B, n_vars, seq_len, d_model = 2, 4, 16, 32
    max_len, offset = 64, 5
    x = jax.random.normal(kx, (B, n_vars, seq_len, d_model), jnp.float32)
    pe = init_pe(max_len, d_model, kp)

    out_kernel = jax.block_until_ready(
        learnable_positional_embedding_fwd(pe, x, offset, force_pallas=True))
    out_auto = jax.block_until_ready(
        learnable_positional_embedding_fwd(pe, x, offset))        # small-copy fallback
    ref = learnable_positional_embedding_ref(pe, x, offset)
    assert out_kernel.shape == (1, 1, seq_len, d_model)
    assert jnp.array_equal(out_kernel, ref), "pallas kernel mismatch (test 1)"
    assert jnp.array_equal(out_auto, ref), "fallback mismatch (test 1)"

    # Test 2: multi-tile grid with a ragged last tile and a ragged max_len.
    seq2, d2, maxl2, off2 = 200, 128, 523, 37
    x2 = jax.random.normal(kx2, (1, 1, seq2, d2), jnp.float32)
    pe_big = init_pe(maxl2, d2, kp2)
    out2 = jax.block_until_ready(
        learnable_positional_embedding_fwd(pe_big, x2, off2,
                                           tile_rows=64, force_pallas=True))
    ref2 = learnable_positional_embedding_ref(pe_big, x2, off2)
    assert out2.shape == (1, 1, seq2, d2)
    assert jnp.array_equal(out2, ref2), "pallas kernel mismatch (test 2)"

    print("KERNEL_OK")
</pallas_src>

<mosaic_0001>
module attributes {stable_mosaic.version = 11 : i64} {
  func.func @kernel(%arg0: i32, %arg1: memref<1xi32, #tpu.memory_space<smem>>, %arg2: memref<64x32xf32, #tpu.memory_space<any>>, %arg3: memref<16x32xf32, #tpu.memory_space<vmem>>, %arg4: memref<!tpu.dma_semaphore, #tpu.memory_space<semaphore_mem>>) attributes {dimension_semantics = [#tpu.dimension_semantics<parallel>], iteration_bounds = array<i64: 1>, scalar_prefetch = 1 : i64, scratch_operands = 1 : i64, tpu.core_type = #tpu.core_type<tc>, window_params = [{}, {transform_indices = @transform_1, window_bounds = array<i64: 16, 32>}]} {
    %c0 = arith.constant 0 : index
    %0 = memref.load %arg1[%c0] : memref<1xi32, #tpu.memory_space<smem>>
    %c16_i32 = arith.constant 16 : i32
    %1 = arith.muli %arg0, %c16_i32 : i32
    %2 = arith.addi %0, %1 : i32
    %c0_i32 = arith.constant 0 : i32
    %3 = tpu.memref_slice %arg2[%2, %c0_i32] : memref<64x32xf32, #tpu.memory_space<any>> -> memref<16x32xf32, #tpu.memory_space<any>>
    tpu.enqueue_dma source(%3 : memref<16x32xf32, #tpu.memory_space<any>>) target(%arg3 : memref<16x32xf32, #tpu.memory_space<vmem>>) target_semaphore(%arg4 : memref<!tpu.dma_semaphore, #tpu.memory_space<semaphore_mem>>)
    %c0_i32_0 = arith.constant 0 : i32
    %4 = tpu.memref_slice %arg2[%2, %c0_i32_0] : memref<64x32xf32, #tpu.memory_space<any>> -> memref<16x32xf32, #tpu.memory_space<any>>
    tpu.wait_dma2 semaphore(%arg4 : memref<!tpu.dma_semaphore, #tpu.memory_space<semaphore_mem>>) src(%4 : memref<16x32xf32, #tpu.memory_space<any>>) dst(%arg3 : memref<16x32xf32, #tpu.memory_space<vmem>>)
    return
  }
  func.func @transform_1(%arg0: i32, %arg1: memref<1xi32, #tpu.memory_space<smem>>) -> (i32, i32) {
    %c0_i32 = arith.constant 0 : i32
    %c0_i32_0 = arith.constant 0 : i32
    return %arg0, %c0_i32 : i32, i32
  }
}

</mosaic_0001>

<bundles_post_ra>
// kernel: tpu_custom_call.1
= control target key start
LH: loop header
LB: loop body
LE: loop exit
PB: predicated region body
PF: predicated region fallthrough
CT: control target
= control target key end

     0   :  { %8 = vsyncpa [#allocation6], 0  ;;  %s157_s0 = inlined_call_operand.<no memory space> [shape: s32[1], index: 0, kind: input, shape index: {}]   ;;  %s158_s1 = inlined_call_operand.vmem [shape: f32[64,32], index: 1, kind: input, shape index: {}]   ;;  %s159_s2 = inlined_call_operand.hbm [shape: f32[16,32], index: 2, kind: output, shape index: {}]  }
   0x1   :  { %s12_s13 = scalar_lea.vmem %s158_s1, %s157_s0 }
   0x2   :  { %v45_v0 = vld [vmem:[%s12_s13] sm:$0xff]  ;;  %v47_v1 = vld [vmem:[%s12_s13 + $0x8] sm:$0xff] }
   0x3   :  { %46 = vst [vmem:[#allocation5] sm:$0xff] %v45_v0  ;;  %48 = vst [vmem:[#allocation5 + $0x8] sm:$0xff] %v47_v1 }
   0x4   :  { %56 = vsyncadd [#allocation2], 256 }
   0x5   :  { %117 = dma.done.wait [#allocation2], 256 }
   0x6   :  { %118 = vsyncadd [#allocation2], 4294967040  ;;  %s121_s14 = smov [#allocation5]  }
   0x7   :  { %s65_s15 = sshll.u32 %s121_s14, 4  ;;  %s66_s15 = int_to_ptr.vmem [resolvable:$true] %s65_s15 }
   0x8   :  { %s95_s16 = scalar_lea.vmem %s66_s15, 256  ;;  %p100_p1 = scmp.lt.s32.totalorder %s66_s15, %s66_s15 }
   0x9   :  { %p96_p0 = scmp.ne.s32.totalorder %s66_s15, %s95_s16  ;;  %p101_p2 = scmp.lt.s32.totalorder %s95_s16, %s95_s16 }
   0xb   :  { %p102_p3 = por %p101_p2, %p100_p1 }
   0xd   :  { %p103_p4 = pnand %p102_p3, %p96_p0 }
   0xf   :  { %106 = shalt.err (!%p103_p4)
}
  0x10   :  { %s107_s0 = scalar_lea.hbm %s159_s2, 256 }
  0x11   :  { %p108_p5 = scmp.ne.s32.totalorder %s159_s2, %s107_s0  ;;  %p111_p6 = scmp.lt.u32.totalorder %s107_s0, %s159_s2 }
  0x13   :  { %p113_p7 = pnand %p111_p6, %p108_p5 }
  0x15   :  { %116 = shalt.err (!%p113_p7)
}
  0x16   :  { %s122_s22 = smov 128   ;;  %s123_s23 = smov 8  }
  0x17   :  { %71 = dma.vmem_to_hbm [thread:$0]  %s66_s15, 256, %s159_s2, [#allocation6], %s122_s22, %s122_s22, %s123_s23  }
  0x18   :  { %119 = dma.done.wait [#allocation6], 256  }
  0x19   :  { %120 = vsyncadd [#allocation6], 4294967040 }
  0x1a   :  { %75 = vsyncpa [#allocation6], 1 }
  0x1b   :  { %76 = vsyncmov [#allocation2] }
  0x1e   :  { %s77_s26 = vpop.sfrf %76 }
  0x1f   :  { %p91_p8 = scmp.ne.s32.totalorder %s77_s26, 0 }
  0x21   :  { %81 = shalt.err (%p91_p8)  }

</bundles_post_ra>
